<compile_context>
chip_gen: v7x
topology: tpu7x:2x2x1
jax: 0.10.0
libtpu: 0.0.40
codegen_flags: <defaults>
</compile_context>

<pallas_src>
import functools
import math

import jax
import jax.numpy as jnp
import numpy as np
from jax.experimental import pallas as pl
from jax.experimental.pallas import tpu as pltpu


_INV_LN10 = 1.0 / math.log(10.0)


def get_solid_angle_weights(shape):
    """Per-row solid-angle weights for an equirectangular NCHW image.

    # TODO(synk): the reference's get_solid_angle_weights() source is not
    # provided; this is the standard sin(theta)*dtheta*dphi weighting,
    # computed deterministically from the input shape.  Weights are >= 0
    # (sin(theta), theta in (0, pi)), which the kernel relies on to pull the
    # weight out of the abs().
    """
    _, _, H, W = shape
    theta = (jnp.arange(H, dtype=jnp.float32) + 0.5) * (math.pi / H)
    w_row = jnp.sin(theta) * np.float32((math.pi / H) * (2.0 * math.pi / W))
    return w_row.reshape(1, 1, H, 1)  # broadcasts against (N, C, H, W)


def _chunk_fold(p_ref, t_ref):
    """|log(t+1) - log(p+1)| folded lane-chunk-wise to a (tm, 128) slab.

    Slices are at 128-lane boundaries, so the folds are whole-vreg VPU adds
    (no cross-lane XLU work, no relayout).
    """
    p = p_ref[...].astype(jnp.float32)
    t = t_ref[...].astype(jnp.float32)
    d = jnp.abs(jnp.log(t + 1.0) - jnp.log(p + 1.0))
    lanes = d.shape[-1]
    s = d[:, 0:128]
    for j in range(1, lanes // 128):
        s = s + d[:, j * 128:(j + 1) * 128]
    return s


def _loss_kernel_packed(p_ref, t_ref, acc_ref):
    # Lane-packed layout: weight is identical for every row block and is
    # applied to the tiny partials array in the wrapper -> no weight operand.
    @pl.when(pl.program_id(1) == 0)
    def _():
        acc_ref[...] = jnp.zeros_like(acc_ref)

    acc_ref[...] += _chunk_fold(p_ref, t_ref)


def _loss_kernel_col(p_ref, t_ref, w_ref, acc_ref):
    # Weight-column layout: per-row weight (>= 0, 1/ln10 folded in) differs
    # per row block, so it is multiplied into the lane-dense accumulator once
    # per step (single VPU multiply of a (tm, 128) slab).
    @pl.when(pl.program_id(1) == 0)
    def _():
        acc_ref[...] = jnp.zeros_like(acc_ref)

    acc_ref[...] += w_ref[...] * _chunk_fold(p_ref, t_ref)


def _round_up(x, m):
    return -(-x // m) * m


def _vmem_budgets():
    """(tile working-set budget, vmem_limit_bytes), sized per chip generation."""
    try:
        vmem = pltpu.get_tpu_info().vmem_capacity_bytes
    except Exception:
        vmem = 64 * 1024 * 1024
    if vmem >= 100 * 1024 * 1024:            # v5e / v6e: 128 MiB VMEM
        return 24 * 1024 * 1024, 64 * 1024 * 1024
    return 12 * 1024 * 1024, 32 * 1024 * 1024  # v7x: 64 MiB physical


def _pick_tm_divisor(m_rows, align, budget_rows):
    """Largest aligned divisor of m_rows within budget; prefer an even block
    count so the leading 'parallel' axis spans both TensorCores (v7x).
    Assumes m_rows % align == 0 (so `align` itself always works)."""
    budget_rows = max(align, (budget_rows // align) * align)
    budget_rows = min(budget_rows, m_rows)
    for want_even in (True, False):
        tm = budget_rows
        while tm >= align:
            if m_rows % tm == 0 and (not want_even or (m_rows // tm) % 2 == 0):
                return tm
            tm -= align
    return align


def log_l1_loss_solid_angle(prediction, target, *,
                            block_vmem_budget_bytes=None,
                            vmem_limit_bytes=None):
    assert prediction.shape == target.shape
    N, C, H, W = prediction.shape
    M = N * C * H

    budget_default, limit_default = _vmem_budgets()
    if block_vmem_budget_bytes is None:
        block_vmem_budget_bytes = budget_default
    if vmem_limit_bytes is None:
        vmem_limit_bytes = limit_default

    # Per-image-row weight with the 1/ln(10) of log10 folded in (w >= 0).
    w_row = get_solid_angle_weights(prediction.shape).reshape(H) * np.float32(_INV_LN10)

    # ---- lane-dense 2D layout (rows, lanes) --------------------------------
    # Small W: fold k consecutive image rows into the 128-lane axis.
    k = 1
    if W < 128 and 128 % W == 0 and H % (128 // W) == 0:
        k = 128 // W
    L = k * W
    lane_packed = k > 1
    period = H // k if lane_packed else H   # weight pattern period in rows

    in_bytes = prediction.dtype.itemsize + target.dtype.itemsize
    lane_pad = 0
    if not lane_packed and L % 128 != 0:
        lane_pad = _round_up(L, 128) - L    # zero lanes contribute exactly 0
    Lp = L + lane_pad

    # double-buffered p/t tiles + (lane-padded) weight column + accumulator
    per_row_vmem = 2 * Lp * in_bytes + 2 * 128 * 4 + 2 * 128 * 4
    budget_rows = max(8, ((block_vmem_budget_bytes // per_row_vmem) // 8) * 8)

    align = 8 if not lane_packed else (8 * period) // math.gcd(8, period)
    if lane_packed and align > budget_rows:
        # Weight pattern too long to keep tm % period == 0 within the budget.
        k, L, lane_packed, period, align = 1, W, False, H, 8
        lane_pad = (_round_up(L, 128) - L) if (L % 128) else 0
        Lp = L + lane_pad
        per_row_vmem = 2 * Lp * in_bytes + 2 * 128 * 4 + 2 * 128 * 4
        budget_rows = max(8, ((block_vmem_budget_bytes // per_row_vmem) // 8) * 8)

    M2 = M // k
    p2 = prediction.reshape(M2, L)
    t2 = target.reshape(M2, L)

    if M2 % align == 0:
        # No row padding: aligned divisor tile, even block count preferred.
        tm = _pick_tm_divisor(M2, align, budget_rows)
        nblocks = M2 // tm
        m_pad = 0
    else:
        tm = min(max(align, (budget_rows // align) * align), _round_up(M2, align))
        nblocks = -(-M2 // tm)
        if nblocks >= 2:
            nblocks = _round_up(nblocks, 2)  # guarantee the 2-TC split (v7x)
        m_pad = nblocks * tm - M2

    ncores = 2 if (nblocks >= 2 and nblocks % 2 == 0) else 1
    npc = nblocks // ncores

    if m_pad or lane_pad:
        # Padded rows/lanes have p == t == 0 -> |log(1) - log(1)| == 0.
        p2 = jnp.pad(p2, ((0, m_pad), (0, lane_pad)))
        t2 = jnp.pad(t2, ((0, m_pad), (0, lane_pad)))

    row_map = lambda c, i: (c * npc + i, 0)
    in_specs = [pl.BlockSpec((tm, Lp), row_map),
                pl.BlockSpec((tm, Lp), row_map)]
    operands = [p2, t2]

    if lane_packed:
        kernel = _loss_kernel_packed
    else:
        # Tiny (rows, 1) per-row weight column, broadcast along lanes in-kernel.
        w_col = jnp.tile(w_row, N * C)
        if m_pad:
            w_col = jnp.pad(w_col, (0, m_pad))
        operands.append(w_col.reshape(M2 + m_pad, 1))
        in_specs.append(pl.BlockSpec((tm, 1), row_map))
        kernel = _loss_kernel_col

    n_elem = p2.size
    cost = pl.CostEstimate(
        flops=int(6 * n_elem),
        transcendentals=int(2 * n_elem),
        bytes_accessed=int(n_elem * in_bytes + ncores * tm * 128 * 4),
    )

    partials = pl.pallas_call(
        kernel,
        out_shape=jax.ShapeDtypeStruct((ncores * tm, 128), jnp.float32),
        grid_spec=pltpu.PrefetchScalarGridSpec(
            num_scalar_prefetch=0,
            grid=(ncores, npc),
            in_specs=in_specs,
            # Lane-dense resident accumulator: same (tm, 128) block across the
            # reduction axis -> unmasked 128-lane stores only at writeback.
            out_specs=pl.BlockSpec((tm, 128), lambda c, i: (c, 0)),
        ),
        compiler_params=pltpu.CompilerParams(
            dimension_semantics=("parallel", "arbitrary"),
            vmem_limit_bytes=vmem_limit_bytes,
        ),
        cost_estimate=cost,
    )(*operands)

    if lane_packed:
        # Same (tm, 128) weight pattern for every row block (tm % period == 0),
        # so the weight is applied once to the tiny partials array here.
        base = jnp.broadcast_to(w_row.reshape(period, k, 1),
                                (period, k, W)).reshape(period, L)
        w_tile = jnp.tile(base, (tm // period, 1))              # (tm, 128)
        return jnp.sum(partials.reshape(ncores, tm, 128) * w_tile[None])
    # Column path: weights already applied in-kernel.
    return jnp.sum(partials)


if __name__ == "__main__":
    key = jax.random.PRNGKey(0)

    def reference(pred, tgt):
        w = jnp.broadcast_to(get_solid_angle_weights(pred.shape), pred.shape)
        return jnp.sum(jnp.abs(w * (jnp.log10(tgt + 1.0) - jnp.log10(pred + 1.0))))

    shapes = [
        (2, 4, 16, 16),    # small W  -> lane-packed path (k = 8), 2 TC blocks
        (1, 2, 8, 256),    # wide W   -> weight-column path, 2 row blocks
        (1, 1, 10, 256),   # ragged M -> zero-padded rows path
    ]
    ok = True
    for idx, shape in enumerate(shapes):
        k1, k2 = jax.random.split(jax.random.fold_in(key, idx))
        # Keep values >= 0 so log10(x + 1) is well-defined (image data).
        prediction = jax.random.uniform(k1, shape, dtype=jnp.float32) * 2.0
        target = jax.random.uniform(k2, shape, dtype=jnp.float32) * 2.0

        loss = log_l1_loss_solid_angle(prediction, target)
        jax.block_until_ready(loss)

        ref = reference(prediction, target)
        if not jnp.allclose(loss, ref, rtol=1e-5, atol=1e-5):
            ok = False
            print("MISMATCH", shape, float(loss), float(ref))

    if ok:
        print("KERNEL_OK")
</pallas_src>

<mosaic_0001>
module attributes {stable_mosaic.version = 11 : i64} {
  func.func @_loss_kernel_packed(%arg0: i32, %arg1: i32, %arg2: memref<8x128xf32, #tpu.memory_space<vmem>>, %arg3: memref<8x128xf32, #tpu.memory_space<vmem>>, %arg4: memref<8x128xf32, #tpu.memory_space<vmem>>) attributes {dimension_semantics = [#tpu.dimension_semantics<parallel>, #tpu.dimension_semantics<arbitrary>], iteration_bounds = array<i64: 2, 1>, scalar_prefetch = 0 : i64, scratch_operands = 0 : i64, tpu.core_type = #tpu.core_type<tc>, window_params = [{transform_indices = @transform_0, window_bounds = array<i64: 8, 128>}, {transform_indices = @transform_1, window_bounds = array<i64: 8, 128>}, {transform_indices = @transform_2, window_bounds = array<i64: 8, 128>}]} {
    %c0_i32 = arith.constant 0 : i32
    %0 = arith.cmpi eq, %arg1, %c0_i32 : i32
    %1 = arith.extui %0 : i1 to i32
    %c0_i32_0 = arith.constant 0 : i32
    %2 = arith.cmpi ne, %1, %c0_i32_0 : i32
    scf.if %2 {
      %cst_9 = arith.constant 0.000000e+00 : f32
      %16 = vector.broadcast %cst_9 : f32 to vector<8x128xf32>
      %c0_10 = arith.constant 0 : index
      %c0_11 = arith.constant 0 : index
      %17 = vector.load %arg4[%c0_10, %c0_11] : memref<8x128xf32, #tpu.memory_space<vmem>>, vector<8x128xf32>
      tpu.vector_store %arg4[%c0_10, %c0_11], %16 {strides = array<i32>} : memref<8x128xf32, #tpu.memory_space<vmem>>, vector<8x128xf32>,
    } else {
    }
    %c0 = arith.constant 0 : index
    %c0_1 = arith.constant 0 : index
    %3 = vector.load %arg4[%c0, %c0_1] : memref<8x128xf32, #tpu.memory_space<vmem>>, vector<8x128xf32>
    %c0_2 = arith.constant 0 : index
    %c0_3 = arith.constant 0 : index
    %4 = vector.load %arg2[%c0_2, %c0_3] : memref<8x128xf32, #tpu.memory_space<vmem>>, vector<8x128xf32>
    %c0_4 = arith.constant 0 : index
    %c0_5 = arith.constant 0 : index
    %5 = vector.load %arg3[%c0_4, %c0_5] : memref<8x128xf32, #tpu.memory_space<vmem>>, vector<8x128xf32>
    %cst = arith.constant 1.000000e+00 : f32
    %6 = vector.broadcast %cst : f32 to vector<8x128xf32>
    %7 = arith.addf %5, %6 : vector<8x128xf32>
    %8 = math.log %7 : vector<8x128xf32>
    %cst_6 = arith.constant 1.000000e+00 : f32
    %9 = vector.broadcast %cst_6 : f32 to vector<8x128xf32>
    %10 = arith.addf %4, %9 : vector<8x128xf32>
    %11 = math.log %10 : vector<8x128xf32>
    %12 = arith.subf %8, %11 : vector<8x128xf32>
    %13 = math.absf %12 : vector<8x128xf32>
    %14 = arith.addf %3, %13 : vector<8x128xf32>
    %c0_7 = arith.constant 0 : index
    %c0_8 = arith.constant 0 : index
    %15 = vector.load %arg4[%c0_7, %c0_8] : memref<8x128xf32, #tpu.memory_space<vmem>>, vector<8x128xf32>
    tpu.vector_store %arg4[%c0_7, %c0_8], %14 {strides = array<i32>} : memref<8x128xf32, #tpu.memory_space<vmem>>, vector<8x128xf32>,
    return
  }
  func.func @transform_0(%arg0: i32, %arg1: i32) -> (i32, i32) {
    %c1_i32 = arith.constant 1 : i32
    %0 = arith.muli %arg0, %c1_i32 : i32
    %1 = arith.addi %0, %arg1 : i32
    %c0_i32 = arith.constant 0 : i32
    %c0_i32_0 = arith.constant 0 : i32
    return %1, %c0_i32 : i32, i32
  }
  func.func @transform_1(%arg0: i32, %arg1: i32) -> (i32, i32) {
    %c1_i32 = arith.constant 1 : i32
    %0 = arith.muli %arg0, %c1_i32 : i32
    %1 = arith.addi %0, %arg1 : i32
    %c0_i32 = arith.constant 0 : i32
    %c0_i32_0 = arith.constant 0 : i32
    return %1, %c0_i32 : i32, i32
  }
  func.func @transform_2(%arg0: i32, %arg1: i32) -> (i32, i32) {
    %c0_i32 = arith.constant 0 : i32
    %c0_i32_0 = arith.constant 0 : i32
    return %arg0, %c0_i32 : i32, i32
  }
}

</mosaic_0001>

<bundles_post_ra>
// kernel: tpu_custom_call.1
= control target key start
LH: loop header
LB: loop body
LE: loop exit
PB: predicated region body
PF: predicated region fallthrough
CT: control target
= control target key end

     0   :  { %7 = vsyncpa [#allocation3], 0  ;;  %s825_s0 = inlined_call_operand.hbm [shape: f32[16,128], index: 0, kind: input, shape index: {}]   ;;  %s826_s1 = inlined_call_operand.hbm [shape: f32[16,128], index: 1, kind: input, shape index: {}]   ;;  %s827_s2 = inlined_call_operand.hbm [shape: f32[16,128], index: 2, kind: output, shape index: {}]  }
   0x1   :  { %9 = vsyncpa [#allocation3 + $0x1], 0 }
   0x2   :  { %10 = vsyncpa [#allocation6], 0 }
   0x3   :  { %12 = vsyncpa [#allocation6 + $0x1], 0 }
   0x4   :  { %13 = vsyncpa [#allocation4], 0 }
   0x5   :  { %15 = vsyncpa [#allocation4 + $0x1], 0  ;;  %s605_s9 = smov 0   ;;  %s607_s10 = smov 0  }
   0x6   :  { %s609_s11 = smov 0   ;;  %s611_s12 = smov 0  }
   0x7   :  { %s613_s13 = smov 0   ;;  %s615_s14 = smov 0  }
   0x8 LB: > { %s351_s15 = sadd.s32 4294967295, %s585_s14   ;;  %s352_s16 = sadd.s32 4294967294, %s585_s14   ;;  %s585_s14 = sphi %s615_s14, %s21_s14   ;;  %s581_s13 = sphi %s613_s13, %s847_s13   ;;  %s577_s12 = sphi %s611_s12, %s846_s12   ;;  %s573_s11 = sphi %s609_s11, %s845_s11   ;;  %s569_s10 = sphi %s607_s10, %s844_s10   ;;  %s565_s9 = sphi %s605_s9, %s843_s9  }
   0x9   : > { %s33_s17 = sadd.s32 1, %s581_s13  ;;  %s42_s18 = sadd.s32 1, %s573_s11 }
   0xa   : > { %p35_p0 = scmp.ge.s32.totalorder %s33_s17, 2  ;;  %p49_p1 = scmp.ne.s32.totalorder %s573_s11, %s569_s10 }
   0xb   : > { %p50_p2 = scmp.eq.s32.totalorder %s585_s14, 0  ;;  %p55_p3 = scmp.ne.s32.totalorder %s569_s10, %s565_s9 }
   0xc   : > { %s849_s17 = smov (%p35_p0, %s33_s17), 0  ;;  %p56_p5 = scmp.eq.s32.totalorder %s351_s15, 0 }
   0xd   : > { %p646_p4 = por %p50_p2, %p49_p1  ;;  %s39_s20 = ssub.s32 %s581_s13, %s849_s17 }
   0xe   : > { %p107_p6 = scmp.eq.s32.totalorder %s351_s15, 1  ;;  %p40_p7 = scmp.eq.s32.totalorder %s39_s20, 0 }
   0xf   : > { %p652_p8 = por %p56_p5, %p55_p3  ;;  %p113_p10 = scmp.eq.s32.totalorder %s352_s16, 1 }
  0x10   : > { %p656_p9 = por %p107_p6, %p49_p1  ;;  %p384_p13 = scmp.lt.s32.totalorder %s585_s14, 2 }
  0x11   : > { %s831_s21 = scalar_select %p652_p8, 1, 0 }
  0x12   : > { %s832_s22 = scalar_select %p656_p9, 1, 0 }
  0x13   : > { %s661_s23 = scalar_select %p40_p7, %s573_s11, %s42_s18  }
  0x14   : > { %p663_p11 = por %p113_p10, %p55_p3  ;;  %s670_s25 = sand.u32 1, %s573_s11  }
  0x15   : > { %s355_s26 = sshll.u32 %s670_s25, 3  ;;  %s356_s27 = sshll.u32 %s581_s13, 7 }
  0x16   : > { %s833_s24 = scalar_select %p663_p11, 1, 0 }
  0x17   : > { %s679_s30 = scalar_lea.hbm %s825_s0, %s356_s27  ;;  %s137_s3 = scalar_lea.vmem [#allocation2], %s355_s26 }
  0x18   : > { %s145_s4 = sshll.u32 %s137_s3, 4  ;;  %p687_p0 = pnand %p384_p13, %p646_p4  ;;  %s683_s4 = int_to_ptr.vmem [resolvable:$true] %s145_s4 }
  0x19   : > { %s134_s6 = scalar_lea.sflag [#allocation3], %s670_s25  ;;  %s439_s7 = scalar_lea.hbm %s679_s30, 128 }
  0x1a   : > { %p440_p3 = scmp.ne.s32.totalorder %s679_s30, %s439_s7  ;;  %p441_p5 = pneg %p687_p0 }
  0x1b   : > { %s444_s16 = scalar_lea.hbm %s825_s0, 256  ;;  %p445_p4 = scmp.lt.u32.totalorder %s679_s30, %s825_s0 }
  0x1c   : > { %p442_p6 = pnand %p441_p5, %p440_p3  ;;  %p446_p10 = scmp.lt.u32.totalorder %s444_s16, %s439_s7 }
  0x1d   : > { %p448_p12 = scmp.lt.u32.totalorder %s439_s7, %s679_s30 }
  0x1e   : > { %p443_p7 = pneg %p442_p6  ;;  %p447_p13 = por %p446_p10, %p445_p4 }
  0x20   : > { %p449_p1 = por %p448_p12, %p447_p13 }
  0x22   : > { %p450_p2 = pnand %p449_p1, %p443_p7 }
  0x24   : > { %453 = shalt.err (!%p450_p2)
}
  0x25   : > { %s454_s20 = scalar_lea.vmem %s683_s4, 128  ;;  %s587_s28 = smov [#allocation2]  }
  0x26   : > { %p455_p3 = scmp.ne.s32.totalorder %s683_s4, %s454_s20  ;;  %s459_s29 = sshll.u32 %s587_s28, 4  ;;  %s460_s29 = int_to_ptr.vmem [resolvable:$false] %s459_s29 }
  0x27   : > { %s461_s3 = scalar_lea.vmem %s460_s29, 256  ;;  %p462_p9 = scmp.lt.s32.totalorder %s683_s4, %s460_s29 }
  0x28   : > { %p457_p6 = pnand %p455_p3, %p441_p5  ;;  %p463_p4 = scmp.lt.s32.totalorder %s461_s3, %s454_s20 }
  0x2a   : > { %p458_p11 = pneg %p457_p6  ;;  %p464_p10 = por %p463_p4, %p462_p9 }
  0x2c   : > { %p465_p12 = pnand %p464_p10, %p458_p11 }
  0x2e   : > { %468 = shalt.err (!%p465_p12)
}
  0x2f   : > { %376 = dma.hbm_to_vmem [thread:$0]  (!%p687_p0), %s679_s30, 128, %s683_s4, %s134_s6  }
  0x30   : > { %p835_p1 = scmp.lt.s32.totalorder %s585_s14, 3  ;;  %p836_p2 = scmp.ge.s32.totalorder %s585_s14, 1 }
  0x31   : > { %s732_s16 = scalar_lea.hbm %s826_s1, %s356_s27  ;;  %s156_s18 = scalar_lea.vmem [#allocation5], %s355_s26 }
  0x32   : > { %p723_p7 = pnand %p836_p2, %p835_p1  ;;  %s164_s19 = sshll.u32 %s156_s18, 4  ;;  %s165_s19 = int_to_ptr.vmem [resolvable:$true] %s164_s19 }
  0x33   : > { %s153_s30 = scalar_lea.sflag [#allocation6], %s670_s25  ;;  %s469_s4 = scalar_lea.hbm %s732_s16, 128 }
  0x34   : > { %s837_s7 = scalar_select %p723_p7, 1, 0 }
  0x35   : > { %p470_p9 = scmp.ne.s32.totalorder %s732_s16, %s469_s4  ;;  %s474_s27 = scalar_lea.hbm %s826_s1, 256 }
  0x36   : > { %p475_p3 = scmp.lt.u32.totalorder %s732_s16, %s826_s1  ;;  %p476_p6 = scmp.lt.u32.totalorder %s474_s27, %s469_s4 }
  0x37   : > { %p472_p11 = pnand %p470_p9, %p441_p5  ;;  %p478_p10 = scmp.lt.u32.totalorder %s469_s4, %s732_s16 }
  0x38   : > { %p477_p4 = por %p476_p6, %p475_p3 }
  0x39   : > { %p473_p13 = pneg %p472_p11 }
  0x3a   : > { %p479_p12 = por %p478_p10, %p477_p4 }
  0x3c   : > { %p480_p1 = pnand %p479_p12, %p473_p13 }
  0x3e   : > { %483 = shalt.err (!%p480_p1)
}
  0x3f   : > { %s484_s25 = scalar_lea.vmem %s165_s19, 128  ;;  %s588_s26 = smov [#allocation5]  }
  0x40   : > { %p485_p2 = scmp.ne.s32.totalorder %s165_s19, %s484_s25  ;;  %s489_s3 = sshll.u32 %s588_s26, 4  ;;  %s490_s3 = int_to_ptr.vmem [resolvable:$false] %s489_s3 }
  0x41   : > { %s491_s8 = scalar_lea.vmem %s490_s3, 256  ;;  %p492_p8 = scmp.lt.s32.totalorder %s165_s19, %s490_s3 }
  0x42   : > { %p487_p9 = pnand %p485_p2, %p441_p5  ;;  %p493_p7 = scmp.lt.s32.totalorder %s491_s8, %s484_s25 }
  0x44   : > { %p488_p11 = pneg %p487_p9  ;;  %p494_p3 = por %p493_p7, %p492_p8 }
  0x46   : > { %p495_p6 = pnand %p494_p3, %p488_p11 }
  0x48   : > { %498 = shalt.err (!%p495_p6)
}
  0x49   : > { %379 = dma.hbm_to_vmem [thread:$0]  (!%p687_p0), %s732_s16, 128, %s165_s19, %s153_s30  }
  0x4a   : > { %p838_p13 = scmp.ne.s32.totalorder %s837_s7, 0 }
  0x4b   : > { %s759_s15 = sand.u32 (!%p838_p13), 1, %s569_s10   ;;  %p839_p5 = scmp.ne.s32.totalorder (!%p838_p13), %s831_s21, 0 }
  0x4c   : > { %173 = sbr.rel (%p838_p13) target bundleno = 121 (0x79), region = 28  ;;  %s360_s18 = sshll.u32 (!%p838_p13), %s759_s15, 3 }
  0x4d   : > { %s176_s4 = scalar_lea.sflag (!%p838_p13), [#allocation3], %s759_s15  ;;  %s179_s6 = scalar_lea.vmem (!%p838_p13), [#allocation2], %s360_s18 }
  0x53   : > { %552 = dma.done.wait (%p839_p5), %s176_s4, 128  }
  0x54   : > { %554 = vsyncadd (%p839_p5), %s176_s4, 4294967168  ;;  %s185_s5 = scalar_lea.sflag [#allocation6], %s759_s15  ;;  %s188_s16 = scalar_lea.vmem [#allocation5], %s360_s18 }
  0x55   : > { %556 = dma.done.wait (%p839_p5), %s185_s5, 128  }
  0x56   : > { %558 = vsyncadd (%p839_p5), %s185_s5, 4294967168  ;;  %v222_v0 = vld [vmem:[%s179_s6] sm:$0xff]  ;;  %v223_v1 = vld [vmem:[%s188_s16] sm:$0xff]  ;;  %s364_s7 = sshll.u32 %s577_s12, 7  ;;  %s213_s19 = scalar_lea.vmem [#allocation7], %s360_s18 }
  0x57   : > { %v224_v2 = vadd.f32 1.0, %v223_v1  ;;  %v227_v3 = vadd.f32 1.0, %v222_v0  ;;  %s248_s30 = sshll.u32 %s213_s19, 4  ;;  %s776_s27 = scalar_lea.hbm %s827_s2, %s364_s7  ;;  %s778_s30 = int_to_ptr.vmem [resolvable:$true] %s248_s30 }
  0x58   : > { %s235_s28 = scalar_lea.sflag [#allocation4], %s759_s15  ;;  %s499_s29 = scalar_lea.vmem %s778_s30, 128 }
  0x59   : > { %435 = vlog2.f32 %v224_v2  ;;  %p500_p8 = scmp.ne.s32.totalorder %s778_s30, %s499_s29  ;;  %p840_p0 = scmp.ne.s32.totalorder %s832_s22, 0 }
  0x5a   : > { %437 = vlog2.f32 %v227_v3  ;;  %s589_s12 = smov [#allocation7]  }
  0x5b   : > { %p501_p7 = pnand %p500_p8, %p840_p0  ;;  %s503_s25 = sshll.u32 %s589_s12, 4  ;;  %s504_s25 = int_to_ptr.vmem [resolvable:$false] %s503_s25 }
  0x5c   : > { %s505_s26 = scalar_lea.vmem %s504_s25, 256  ;;  %p506_p10 = scmp.lt.s32.totalorder %s778_s30, %s504_s25 }
  0x5d   : > { %p502_p4 = pneg %p501_p7  ;;  %p507_p12 = scmp.lt.s32.totalorder %s505_s26, %s499_s29 }
  0x5f   : > { %p508_p1 = por %p507_p12, %p506_p10 }
  0x61   : > { %p509_p2 = pnand %p508_p1, %p502_p4 }
  0x63   : > { %v436_v4 = vpop.eup %435 }
  0x64   : > { %v438_v5 = vpop.eup %437  ;;  %v226_v6 = vmul.f32 0.6931472, %v436_v4 }
  0x65   : > { %v229_v7 = vmul.f32 0.6931472, %v438_v5 }
  0x67   : > { %v230_v8 = vsub.f32 %v226_v6, %v229_v7 }
  0x69   : > { %v231_v9 = vand.u32 2147483647, %v230_v8 }
  0x6b   : > { %233 = vst [vmem:[%s213_s19] sm:$0xff] %v231_v9 }
  0x6c   : > { %512 = shalt.err (!%p509_p2)
}
  0x6d   : > { %s513_s3 = scalar_lea.hbm %s776_s27, 128  ;;  %s517_s18 = scalar_lea.hbm %s827_s2, 256 }
  0x6e   : > { %p514_p9 = scmp.ne.s32.totalorder %s776_s27, %s513_s3  ;;  %p518_p6 = scmp.lt.u32.totalorder %s776_s27, %s827_s2 }
  0x6f   : > { %p519_p13 = scmp.lt.u32.totalorder %s517_s18, %s513_s3  ;;  %p521_p8 = scmp.lt.u32.totalorder %s513_s3, %s776_s27 }
  0x70   : > { %p515_p11 = pnand %p514_p9, %p840_p0 }
  0x71   : > { %p520_p5 = por %p519_p13, %p518_p6 }
  0x72   : > { %p516_p3 = pneg %p515_p11 }
  0x73   : > { %p522_p7 = por %p521_p8, %p520_p5 }
  0x75   : > { %p523_p4 = pnand %p522_p7, %p516_p3 }
  0x77   : > { %526 = shalt.err (!%p523_p4)
}
  0x78   : > { %371 = dma.vmem_to_hbm [thread:$0]  (%p840_p0), %s778_s30, 128, %s776_s27, %s235_s28  }
  0x79 PF: > { %s260_s5 = sand.u32 1, %s565_s9   ;;  %p841_p10 = scmp.ne.s32.totalorder %s833_s24, 0 }
  0x7a   : > { %p842_p12 = scmp.ge.s32.totalorder %s585_s14, 2  ;;  %s261_s16 = scalar_lea.sflag [#allocation4], %s260_s5 }
  0x7c   : > { %p381_p1 = pnand %p842_p12, %p841_p10 }
  0x7e   : > { %560 = dma.done.wait (!%p381_p1), %s261_s16, 128  }
  0x7f   : > { %562 = vsyncadd (!%p381_p1), %s261_s16, 4294967168  ;;  %s21_s14 = sadd.s32 1, %s585_s14   ;;  %s843_s9 = smov %s569_s10 }
  0x80   : > { %p18_p2 = scmp.ge.s32.totalorder %s21_s14, 4   ;;  %s844_s10 = smov %s573_s11 }
  0x81   : > { %s845_s11 = smov %s661_s23  ;;  %s846_s12 = smov %s581_s13 }
  0x82   : > { %s847_s13 = smov %s849_s17  ;;  %20 = sbr.rel (!%p18_p2) target bundleno = 8 (0x8), region = 90 }
  0x89   :  { %266 = vsyncpa [#allocation3], 1 }
  0x8a   :  { %268 = vsyncpa [#allocation3 + $0x1], 1 }
  0x8b   :  { %269 = vsyncpa [#allocation6], 1 }
  0x8c   :  { %271 = vsyncpa [#allocation6 + $0x1], 1 }
  0x8d   :  { %272 = vsyncpa [#allocation4], 1 }
  0x8e   :  { %274 = vsyncpa [#allocation4 + $0x1], 1 }

</bundles_post_ra>
